<compile_context>
chip_gen: v7x
topology: tpu7x:2x2x1
jax: 0.10.0
libtpu: 0.0.40
codegen_flags: <defaults>
</compile_context>

<pallas_src>
import jax
import jax.numpy as jnp
from jax import lax
from jax.experimental import pallas as pl
from jax.experimental.pallas import tpu as pltpu

_EPS = 1e-5
_MAX_SAMPLE = 96 * 96
_NEG_BIG = -1e30


def _round_up(x, m):
    return (x + m - 1) // m * m


def _chan_stats(x, eps=_EPS):
    # x: (B, K, N) f32. Returns (scale, shift) with normalized = x*scale + shift.
    # torch .var(dim=2) is unbiased -> ddof=1.
    mean = jnp.mean(x, axis=-1, keepdims=True)
    var = jnp.var(x, axis=-1, ddof=1, keepdims=True)
    scale = lax.rsqrt(var + eps)          # rsqrt instead of divide
    return scale, -mean * scale


def _adaattn_star_kernel(c_ref, ck_ref, gn_ref, scat_ref,
                         c_scale_ref, c_shift_ref, ck_scale_ref, ck_shift_ref,
                         o_ref):
    # Per-(batch, Nc-tile) block.  Shapes (leading block dim of 1 indexed away):
    #   c_ref     (1, C,    T)     content tile
    #   ck_ref    (1, Ck+1, T)     content-key tile (+ constant-1 bias channel)
    #   gn_ref    (1, Ck+1, Ngp)   pre-normalized style key (+ 0/-1e30 bias row)
    #   scat_ref  (1, CP2,  Ngp)   [style ; style**2], zero padded
    #   *_scale / *_shift (1,K,1)  hoisted per-channel norm stats
    #   o_ref     (1, C,    T)
    C = o_ref.shape[1]

    c = c_ref[0].astype(jnp.float32)
    ck = ck_ref[0].astype(jnp.float32)
    gn = gn_ref[0]
    scat = scat_ref[0]

    # Hoisted mean-variance norm, applied as one FMA per tile (no reductions here).
    fn = ck * ck_scale_ref[0] + ck_shift_ref[0]     # (Ck+1, T)
    nc = c * c_scale_ref[0] + c_shift_ref[0]        # (C,    T)

    # Attention logits on the MXU (bf16 operands, f32 accumulate):
    # logits[n, m] = sum_k fn[k, n] * gn[k, m]; pad columns pick up the -1e30 bias.
    logits = lax.dot_general(
        fn.astype(gn.dtype), gn, (((0,), (0,)), ((), ())),
        preferred_element_type=jnp.float32)          # (T, Ngp)

    # Deferred (unnormalized) softmax: pad columns become exp(-1e30 - m) == 0.
    m = jnp.max(logits, axis=-1, keepdims=True)
    p = jnp.exp(logits - m)
    l = jnp.sum(p, axis=-1, keepdims=True)

    # Fused E[style], E[style^2] matmul: stream the big P matrix as the LHS,
    # the small style matrix as the MXU weight (f32 to keep e2 - mean^2 tight).
    ms = lax.dot_general(
        p, scat, (((1,), (1,)), ((), ())),
        preferred_element_type=jnp.float32)          # (T, CP2)

    # Softmax denominator applied once on the small result.
    # (approx=True would push this onto the EUP; kept exact for accuracy.)
    ms = ms * pl.reciprocal(l, approx=False)

    ms_t = ms.T                                      # (CP2, T) XLU transpose (128-aligned)
    mean = ms_t[:C]
    e2 = ms_t[C:2 * C]
    std = jnp.sqrt(jnp.maximum(e2 - mean * mean, 0.0))

    o_ref[0] = (std * nc + mean).astype(o_ref.dtype)


def ada_attn_star(content, style, content_key, style_key, *,
                  tile_n=512, attn_bf16=True, vmem_limit_bytes=None):
    """content/style: (B, C, H, W); content_key/style_key: (B, Ck, Hk, Wk)."""
    b, C, h, w = content.shape
    bs, Cs, hg, wg = style.shape
    bk, Ck, hck, wck = content_key.shape
    bsk, Cks, hgk, wgk = style_key.shape
    assert bs == b and bk == b and bsk == b
    assert Cs == C and Cks == Ck
    assert (hck, wck) == (h, w) and (hgk, wgk) == (hg, wg)

    nc_len = h * w
    ng_len = hg * wg
    assert nc_len > 1 and ng_len > 1     # unbiased variance needs N > 1
    assert ng_len <= _MAX_SAMPLE         # randperm-subsample branch not implemented

    f32 = jnp.float32
    c_flat = content.reshape(b, C, nc_len)
    s_flat = style.reshape(b, C, ng_len).astype(f32)
    ck_flat = content_key.reshape(b, Ck, nc_len).astype(f32)
    sk_flat = style_key.reshape(b, Ck, ng_len).astype(f32)

    # ---- tiny prepass: per-channel stats hoisted out of the tiled kernel ----
    c_scale, c_shift = _chan_stats(c_flat.astype(f32))
    ck_scale, ck_shift = _chan_stats(ck_flat)
    sk_scale, sk_shift = _chan_stats(sk_flat)

    # ---- padded / augmented layouts ----
    ng_pad = _round_up(ng_len, 128)                        # lane-dense style axis
    tile_n = max(128, _round_up(min(tile_n, _round_up(nc_len, 128)), 128))
    nc_pad = _round_up(nc_len, tile_n)
    cp2 = _round_up(2 * C, 128)                            # 128-aligned fused weight
    n_pad_g = ng_pad - ng_len
    n_pad_c = nc_pad - nc_len

    # Normalized style key + bias row (0 on valid columns, -1e30 on pad columns).
    gn = sk_flat * sk_scale + sk_shift
    gn = jnp.pad(gn, ((0, 0), (0, 0), (0, n_pad_g)))
    bias_row = jnp.concatenate(
        [jnp.zeros((b, 1, ng_len), f32),
         jnp.full((b, 1, n_pad_g), _NEG_BIG, f32)], axis=-1)
    gn_aug = jnp.concatenate([gn, bias_row], axis=1)       # (B, Ck+1, Ngp)
    gn_aug = gn_aug.astype(jnp.bfloat16 if attn_bf16 else f32)

    # Content key + constant-1 channel (pairs with the bias row above).
    ck_aug = jnp.concatenate([ck_flat, jnp.ones((b, 1, nc_len), f32)], axis=1)
    ck_aug = jnp.pad(ck_aug, ((0, 0), (0, 0), (0, n_pad_c)))
    ck_scale_aug = jnp.concatenate([ck_scale, jnp.ones((b, 1, 1), f32)], axis=1)
    ck_shift_aug = jnp.concatenate([ck_shift, jnp.zeros((b, 1, 1), f32)], axis=1)

    c_pad = jnp.pad(c_flat, ((0, 0), (0, 0), (0, n_pad_c)))

    # Fused second-matmul weight: [style ; style**2], zero padded to (CP2, Ngp).
    scat = jnp.concatenate([s_flat, s_flat * s_flat], axis=1)
    scat = jnp.pad(scat, ((0, 0), (0, cp2 - 2 * C), (0, n_pad_g)))

    grid = (b, nc_pad // tile_n)

    if vmem_limit_bytes is None:
        gn_b = 2 if attn_bf16 else 4
        est = (2 * 4 * tile_n * (2 * C + (Ck + 1))                  # streamed c/ck/out tiles
               + 2 * ng_pad * ((Ck + 1) * gn_b + cp2 * 4)           # resident gn/scat blocks
               + 4 * 4 * tile_n * ng_pad)                           # logits / p temporaries
        vmem_limit_bytes = int(min(max(2 * est, 32 << 20), 64 << 20))

    out = pl.pallas_call(
        _adaattn_star_kernel,
        out_shape=jax.ShapeDtypeStruct((b, C, nc_pad), content.dtype),
        grid_spec=pltpu.PrefetchScalarGridSpec(
            num_scalar_prefetch=0,
            grid=grid,
            in_specs=[
                pl.BlockSpec((1, C, tile_n), lambda i, j: (i, 0, j)),
                pl.BlockSpec((1, Ck + 1, tile_n), lambda i, j: (i, 0, j)),
                pl.BlockSpec((1, Ck + 1, ng_pad), lambda i, j: (i, 0, 0)),
                pl.BlockSpec((1, cp2, ng_pad), lambda i, j: (i, 0, 0)),
                pl.BlockSpec((1, C, 1), lambda i, j: (i, 0, 0)),
                pl.BlockSpec((1, C, 1), lambda i, j: (i, 0, 0)),
                pl.BlockSpec((1, Ck + 1, 1), lambda i, j: (i, 0, 0)),
                pl.BlockSpec((1, Ck + 1, 1), lambda i, j: (i, 0, 0)),
            ],
            out_specs=pl.BlockSpec((1, C, tile_n), lambda i, j: (i, 0, j)),
        ),
        compiler_params=pltpu.CompilerParams(
            dimension_semantics=("parallel", "parallel"),
            vmem_limit_bytes=vmem_limit_bytes,
        ),
    )(c_pad, ck_aug, gn_aug, scat, c_scale, c_shift, ck_scale_aug, ck_shift_aug)

    return out[:, :, :nc_len].reshape(b, C, h, w)


def _reference(content, style, content_key, style_key):
    # Pure-JAX reference mirroring the PyTorch forward (for sanity check).
    def mvn(x):
        b, c, hh, ww = x.shape
        flat = x.reshape(b, c, -1)
        mean = flat.mean(axis=2).reshape(b, c, 1, 1)
        var = flat.var(axis=2, ddof=1) + _EPS
        std = jnp.sqrt(var).reshape(b, c, 1, 1)
        return (x - mean) / std

    F = mvn(content_key)
    G = mvn(style_key)
    H = style
    b, _, hg, wg = G.shape
    Gf = G.reshape(b, G.shape[1], hg * wg)
    style_flat = H.reshape(b, H.shape[1], hg * wg).transpose(0, 2, 1)
    b, _, h, w = F.shape
    Ff = F.reshape(b, F.shape[1], h * w).transpose(0, 2, 1)
    S = jax.nn.softmax(jnp.einsum("bnc,bcm->bnm", Ff, Gf), axis=-1)
    mean = jnp.einsum("bnm,bmc->bnc", S, style_flat)
    std = jnp.sqrt(jnp.maximum(
        jnp.einsum("bnm,bmc->bnc", S, style_flat ** 2) - mean ** 2, 0.0))
    mean = mean.reshape(b, h, w, -1).transpose(0, 3, 1, 2)
    std = std.reshape(b, h, w, -1).transpose(0, 3, 1, 2)
    return std * mvn(content) + mean


if __name__ == "__main__":
    key = jax.random.PRNGKey(0)
    k1, k2, k3, k4 = jax.random.split(key, 4)

    B, C, Ck = 2, 4, 8
    H, W = 16, 16        # content spatial -> Nc = 256 (two 128-row tiles)
    Hg, Wg = 8, 8        # style spatial   -> Ng = 64 (lane-padded to 128)

    content = jax.random.normal(k1, (B, C, H, W), dtype=jnp.float32)
    style = jax.random.normal(k2, (B, C, Hg, Wg), dtype=jnp.float32)
    content_key = jax.random.normal(k3, (B, Ck, H, W), dtype=jnp.float32)
    style_key = jax.random.normal(k4, (B, Ck, Hg, Wg), dtype=jnp.float32)

    out = ada_attn_star(content, style, content_key, style_key, tile_n=128)
    out = jax.block_until_ready(out)

    ref = _reference(content, style, content_key, style_key)
    assert out.shape == ref.shape == (B, C, H, W)
    # bf16 attention-logit operands contribute a few 1e-3 of softmax-amplified
    # error; everything downstream of the logits (exp, P matmul, variance) is f32.
    assert jnp.allclose(out, ref, rtol=2e-2, atol=3e-2), (
        float(jnp.max(jnp.abs(out - ref))))

    print("KERNEL_OK")
</pallas_src>

<mosaic_0001>
module attributes {stable_mosaic.version = 11 : i64} {
  func.func @_adaattn_star_kernel(%arg0: i32, %arg1: i32, %arg2: memref<1x4x128xf32, #tpu.memory_space<vmem>>, %arg3: memref<1x9x128xf32, #tpu.memory_space<vmem>>, %arg4: memref<1x9x128xbf16, #tpu.memory_space<vmem>>, %arg5: memref<1x128x128xf32, #tpu.memory_space<vmem>>, %arg6: memref<1x4x1xf32, #tpu.memory_space<vmem>>, %arg7: memref<1x4x1xf32, #tpu.memory_space<vmem>>, %arg8: memref<1x9x1xf32, #tpu.memory_space<vmem>>, %arg9: memref<1x9x1xf32, #tpu.memory_space<vmem>>, %arg10: memref<1x4x128xf32, #tpu.memory_space<vmem>>) attributes {dimension_semantics = [#tpu.dimension_semantics<parallel>, #tpu.dimension_semantics<parallel>], iteration_bounds = array<i64: 2, 2>, scalar_prefetch = 0 : i64, scratch_operands = 0 : i64, tpu.core_type = #tpu.core_type<tc>, window_params = [{transform_indices = @transform_0, window_bounds = array<i64: 1, 4, 128>}, {transform_indices = @transform_1, window_bounds = array<i64: 1, 9, 128>}, {transform_indices = @transform_2, window_bounds = array<i64: 1, 9, 128>}, {transform_indices = @transform_3, window_bounds = array<i64: 1, 128, 128>}, {transform_indices = @transform_4, window_bounds = array<i64: 1, 4, 1>}, {transform_indices = @transform_5, window_bounds = array<i64: 1, 4, 1>}, {transform_indices = @transform_6, window_bounds = array<i64: 1, 9, 1>}, {transform_indices = @transform_7, window_bounds = array<i64: 1, 9, 1>}, {transform_indices = @transform_8, window_bounds = array<i64: 1, 4, 128>}]} {
    %c0 = arith.constant 0 : index
    %c0_0 = arith.constant 0 : index
    %c0_1 = arith.constant 0 : index
    %0 = vector.load %arg2[%c0, %c0_0, %c0_1] : memref<1x4x128xf32, #tpu.memory_space<vmem>>, vector<1x4x128xf32>
    %1 = vector.shape_cast %0 : vector<1x4x128xf32> to vector<4x128xf32>
    %c0_2 = arith.constant 0 : index
    %c0_3 = arith.constant 0 : index
    %c0_4 = arith.constant 0 : index
    %2 = vector.load %arg3[%c0_2, %c0_3, %c0_4] : memref<1x9x128xf32, #tpu.memory_space<vmem>>, vector<1x9x128xf32>
    %3 = vector.shape_cast %2 : vector<1x9x128xf32> to vector<9x128xf32>
    %c0_5 = arith.constant 0 : index
    %c0_6 = arith.constant 0 : index
    %c0_7 = arith.constant 0 : index
    %4 = vector.load %arg4[%c0_5, %c0_6, %c0_7] : memref<1x9x128xbf16, #tpu.memory_space<vmem>>, vector<1x9x128xbf16>
    %5 = vector.shape_cast %4 : vector<1x9x128xbf16> to vector<9x128xbf16>
    %c0_8 = arith.constant 0 : index
    %c0_9 = arith.constant 0 : index
    %c0_10 = arith.constant 0 : index
    %6 = vector.load %arg5[%c0_8, %c0_9, %c0_10] : memref<1x128x128xf32, #tpu.memory_space<vmem>>, vector<1x128x128xf32>
    %7 = vector.shape_cast %6 : vector<1x128x128xf32> to vector<128x128xf32>
    %c0_11 = arith.constant 0 : index
    %c0_12 = arith.constant 0 : index
    %c0_13 = arith.constant 0 : index
    %8 = vector.load %arg8[%c0_11, %c0_12, %c0_13] : memref<1x9x1xf32, #tpu.memory_space<vmem>>, vector<1x9x1xf32>
    %9 = vector.shape_cast %8 : vector<1x9x1xf32> to vector<9x1xf32>
    %10 = vector.broadcast %9 : vector<9x1xf32> to vector<9x128xf32>
    %11 = arith.mulf %3, %10 : vector<9x128xf32>
    %c0_14 = arith.constant 0 : index
    %c0_15 = arith.constant 0 : index
    %c0_16 = arith.constant 0 : index
    %12 = vector.load %arg9[%c0_14, %c0_15, %c0_16] : memref<1x9x1xf32, #tpu.memory_space<vmem>>, vector<1x9x1xf32>
    %13 = vector.shape_cast %12 : vector<1x9x1xf32> to vector<9x1xf32>
    %14 = vector.broadcast %13 : vector<9x1xf32> to vector<9x128xf32>
    %15 = arith.addf %11, %14 : vector<9x128xf32>
    %c0_17 = arith.constant 0 : index
    %c0_18 = arith.constant 0 : index
    %c0_19 = arith.constant 0 : index
    %16 = vector.load %arg6[%c0_17, %c0_18, %c0_19] : memref<1x4x1xf32, #tpu.memory_space<vmem>>, vector<1x4x1xf32>
    %17 = vector.shape_cast %16 : vector<1x4x1xf32> to vector<4x1xf32>
    %18 = vector.broadcast %17 : vector<4x1xf32> to vector<4x128xf32>
    %19 = arith.mulf %1, %18 : vector<4x128xf32>
    %c0_20 = arith.constant 0 : index
    %c0_21 = arith.constant 0 : index
    %c0_22 = arith.constant 0 : index
    %20 = vector.load %arg7[%c0_20, %c0_21, %c0_22] : memref<1x4x1xf32, #tpu.memory_space<vmem>>, vector<1x4x1xf32>
    %21 = vector.shape_cast %20 : vector<1x4x1xf32> to vector<4x1xf32>
    %22 = vector.broadcast %21 : vector<4x1xf32> to vector<4x128xf32>
    %23 = arith.addf %19, %22 : vector<4x128xf32>
    %24 = arith.truncf %15 : vector<9x128xf32> to vector<9x128xbf16>
    %cst = arith.constant dense<0.000000e+00> : vector<128x128xf32>
    %25 = tpu.matmul %24, %5, %cst {dimension_numbers = #tpu.dot_dimension_numbers<[0], [0], [1], [1], [0, 1, 1, 1], [], []>} : vector<9x128xbf16>, vector<9x128xbf16>, vector<128x128xf32> -> vector<128x128xf32>
    %cst_23 = arith.constant dense<0xFF800000> : vector<128xf32>
    %26 = vector.multi_reduction <maximumf>, %25, %cst_23 [1] : vector<128x128xf32> to vector<128xf32>
    %27 = vector.shape_cast %26 : vector<128xf32> to vector<128x1xf32>
    %28 = vector.broadcast %27 : vector<128x1xf32> to vector<128x128xf32>
    %29 = arith.subf %25, %28 : vector<128x128xf32>
    %30 = math.exp %29 : vector<128x128xf32>
    %cst_24 = arith.constant dense<0.000000e+00> : vector<128xf32>
    %31 = vector.multi_reduction <add>, %30, %cst_24 [1] : vector<128x128xf32> to vector<128xf32>
    %32 = vector.shape_cast %31 : vector<128xf32> to vector<128x1xf32>
    %cst_25 = arith.constant dense<0.000000e+00> : vector<128x128xf32>
    %33 = tpu.matmul %30, %7, %cst_25 {dimension_numbers = #tpu.dot_dimension_numbers<[1], [1], [0], [0], [0, 0, 1, 0], [], []>} : vector<128x128xf32>, vector<128x128xf32>, vector<128x128xf32> -> vector<128x128xf32>
    %34 = tpu.reciprocal %32 : vector<128x1xf32> -> vector<128x1xf32>
    %35 = vector.broadcast %34 : vector<128x1xf32> to vector<128x128xf32>
    %36 = arith.mulf %33, %35 : vector<128x128xf32>
    %37 = tpu.transpose %36, [1, 0] : vector<128x128xf32> -> vector<128x128xf32>
    %38 = vector.extract_strided_slice %37 {offsets = [0, 0], sizes = [4, 128], strides = [1, 1]} : vector<128x128xf32> to vector<4x128xf32>
    %39 = vector.extract_strided_slice %37 {offsets = [4, 0], sizes = [4, 128], strides = [1, 1]} : vector<128x128xf32> to vector<4x128xf32>
    %40 = arith.mulf %38, %38 : vector<4x128xf32>
    %41 = arith.subf %39, %40 : vector<4x128xf32>
    %cst_26 = arith.constant 0.000000e+00 : f32
    %42 = vector.broadcast %cst_26 : f32 to vector<4x128xf32>
    %43 = arith.maximumf %41, %42 : vector<4x128xf32>
    %44 = math.sqrt %43 : vector<4x128xf32>
    %45 = arith.mulf %44, %23 : vector<4x128xf32>
    %46 = arith.addf %45, %38 : vector<4x128xf32>
    %c0_27 = arith.constant 0 : index
    %c0_28 = arith.constant 0 : index
    %c0_29 = arith.constant 0 : index
    %47 = vector.load %arg10[%c0_27, %c0_28, %c0_29] : memref<1x4x128xf32, #tpu.memory_space<vmem>>, vector<1x4x128xf32>
    %48 = vector.shape_cast %47 : vector<1x4x128xf32> to vector<4x128xf32>
    %49 = vector.shape_cast %46 : vector<4x128xf32> to vector<1x4x128xf32>
    tpu.vector_store %arg10[%c0_27, %c0_28, %c0_29], %49 {strides = array<i32>} : memref<1x4x128xf32, #tpu.memory_space<vmem>>, vector<1x4x128xf32>,
    return
  }
  func.func @transform_0(%arg0: i32, %arg1: i32) -> (i32, i32, i32) {
    %c0_i32 = arith.constant 0 : i32
    %c0_i32_0 = arith.constant 0 : i32
    return %arg0, %c0_i32, %arg1 : i32, i32, i32
  }
  func.func @transform_1(%arg0: i32, %arg1: i32) -> (i32, i32, i32) {
    %c0_i32 = arith.constant 0 : i32
    %c0_i32_0 = arith.constant 0 : i32
    return %arg0, %c0_i32, %arg1 : i32, i32, i32
  }
  func.func @transform_2(%arg0: i32, %arg1: i32) -> (i32, i32, i32) {
    %c0_i32 = arith.constant 0 : i32
    %c0_i32_0 = arith.constant 0 : i32
    %c0_i32_1 = arith.constant 0 : i32
    return %arg0, %c0_i32, %c0_i32_0 : i32, i32, i32
  }
  func.func @transform_3(%arg0: i32, %arg1: i32) -> (i32, i32, i32) {
    %c0_i32 = arith.constant 0 : i32
    %c0_i32_0 = arith.constant 0 : i32
    %c0_i32_1 = arith.constant 0 : i32
    return %arg0, %c0_i32, %c0_i32_0 : i32, i32, i32
  }
  func.func @transform_4(%arg0: i32, %arg1: i32) -> (i32, i32, i32) {
    %c0_i32 = arith.constant 0 : i32
    %c0_i32_0 = arith.constant 0 : i32
    %c0_i32_1 = arith.constant 0 : i32
    return %arg0, %c0_i32, %c0_i32_0 : i32, i32, i32
  }
  func.func @transform_5(%arg0: i32, %arg1: i32) -> (i32, i32, i32) {
    %c0_i32 = arith.constant 0 : i32
    %c0_i32_0 = arith.constant 0 : i32
    %c0_i32_1 = arith.constant 0 : i32
    return %arg0, %c0_i32, %c0_i32_0 : i32, i32, i32
  }
  func.func @transform_6(%arg0: i32, %arg1: i32) -> (i32, i32, i32) {
    %c0_i32 = arith.constant 0 : i32
    %c0_i32_0 = arith.constant 0 : i32
    %c0_i32_1 = arith.constant 0 : i32
    return %arg0, %c0_i32, %c0_i32_0 : i32, i32, i32
  }
  func.func @transform_7(%arg0: i32, %arg1: i32) -> (i32, i32, i32) {
    %c0_i32 = arith.constant 0 : i32
    %c0_i32_0 = arith.constant 0 : i32
    %c0_i32_1 = arith.constant 0 : i32
    return %arg0, %c0_i32, %c0_i32_0 : i32, i32, i32
  }
  func.func @transform_8(%arg0: i32, %arg1: i32) -> (i32, i32, i32) {
    %c0_i32 = arith.constant 0 : i32
    %c0_i32_0 = arith.constant 0 : i32
    return %arg0, %c0_i32, %arg1 : i32, i32, i32
  }
}

</mosaic_0001>

<bundles_post_ra>
// kernel: tpu_custom_call.1
= control target key start
LH: loop header
LB: loop body
LE: loop exit
PB: predicated region body
PF: predicated region fallthrough
CT: control target
= control target key end

     0   :  { %s2193_s0 = inlined_call_operand.vmem [shape: f32[2,4,256], index: 0, kind: input, shape index: {}]   ;;  %s2194_s1 = inlined_call_operand.vmem [shape: f32[2,9,256], index: 1, kind: input, shape index: {}]   ;;  %s2195_s2 = inlined_call_operand.vmem [shape: bf16[2,9,128], index: 2, kind: input, shape index: {}]   ;;  %s2196_s3 = inlined_call_operand.hbm [shape: f32[2,128,128], index: 3, kind: input, shape index: {}]   ;;  %s2197_s4 = inlined_call_operand.vmem [shape: f32[2,4,1], index: 4, kind: input, shape index: {}]   ;;  %s2198_s5 = inlined_call_operand.vmem [shape: f32[2,4,1], index: 5, kind: input, shape index: {}]   ;;  %s2199_s6 = inlined_call_operand.vmem [shape: f32[2,9,1], index: 6, kind: input, shape index: {}]   ;;  %s2200_s7 = inlined_call_operand.vmem [shape: f32[2,9,1], index: 7, kind: input, shape index: {}]   ;;  %s2201_s8 = inlined_call_operand.hbm [shape: f32[2,4,256], index: 8, kind: output, shape index: {}]  }
   0x1   :  { %2209 = sst [smem:[#allocation16_spill]] %s2193_s0 }
   0x2   :  { %2210 = sst [smem:[#allocation17_spill]] %s2201_s8 }
   0x3   :  { %13 = vsyncpa [#allocation4], 0 }
   0x4   :  { %15 = vsyncpa [#allocation4 + $0x1], 0 }
   0x5   :  { %16 = vsyncpa [#allocation5], 0 }
   0x6   :  { %18 = vsyncpa [#allocation5 + $0x1], 0  ;;  %s1858_s27 = smov 0   ;;  %s1860_s28 = smov 0  }
   0x7   :  { %s1862_s29 = smov 0   ;;  %s1864_s30 = smov 0  }
   0x8   :  { %s1866_s9 = smov 0   ;;  %s1868_s10 = smov 0  }
   0x9   :  { %s1870_s11 = smov 0   ;;  %s1872_s12 = smov 0  }
   0xa   :  { %s1874_s13 = smov 0   ;;  %s1876_s14 = smov 0  }
   0xb   :  { %s1878_s15 = smov 0  }
   0xc LB: > { %2211 = sst [smem:[#allocation9_spill]] %s1765_s27  ;;  %s1280_s16 = sadd.s32 4294967295, %s1805_s15   ;;  %s1805_s15 = sphi %s1878_s15, %s24_s15   ;;  %s1801_s14 = sphi %s1876_s14, %s2242_s14   ;;  %s1797_s13 = sphi %s1874_s13, %s2241_s13   ;;  %s1793_s12 = sphi %s1872_s12, %s2240_s12   ;;  %s1789_s11 = sphi %s1870_s11, %s2239_s11   ;;  %s1785_s10 = sphi %s1868_s10, %s2231_s10   ;;  %s1781_s9 = sphi %s1866_s9, %s2238_s9   ;;  %s1777_s30 = sphi %s1864_s30, %s2237_s30   ;;  %s1773_s29 = sphi %s1862_s29, %s2236_s29   ;;  %s1769_s28 = sphi %s1860_s28, %s2235_s28   ;;  %s1765_s27 = sphi %s1858_s27, %s2234_s27  }
   0xd   : > { %2212 = sst [smem:[#allocation10_spill]] %s1785_s10  ;;  %s1281_s17 = sadd.s32 4294967294, %s1805_s15  }
   0xe   : > { %s33_s18 = sadd.s32 1, %s1797_s13  ;;  %s36_s19 = sadd.s32 1, %s1801_s14 }
   0xf   : > { %p34_p0 = scmp.ge.s32.totalorder %s33_s18, 2  ;;  %s73_s20 = sadd.s32 1, %s1785_s10 }
  0x10   : > { %p80_p1 = scmp.ne.s32.totalorder %s1785_s10, %s1781_s9  ;;  %p81_p2 = scmp.eq.s32.totalorder %s1805_s15, 0 }
  0x11   : > { %s2244_s18 = smov (%p34_p0, %s33_s18), 0  ;;  %s2246_s19 = smov (!%p34_p0, %s36_s19), %s1801_s14 }
  0x12   : > { %2213 = sst [smem:[#allocation11_spill]] %s2244_s18  ;;  %s69_s21 = ssub.s32 %s1797_s13, %s2244_s18 }
  0x13   : > { %p1929_p3 = por %p81_p2, %p80_p1  ;;  %p38_p4 = scmp.ge.s32.totalorder %s2246_s19, 2 }
  0x14   : > { %s125_s23 = sadd.s32 1, %s1777_s30  ;;  %p132_p5 = scmp.ne.s32.totalorder %s1777_s30, %s1773_s29 }
  0x15   : > { %p138_p6 = scmp.ne.s32.totalorder %s1773_s29, %s1769_s28  ;;  %s2248_s19 = smov (%p38_p4, %s2246_s19), 0 }
  0x16   : > { %2215 = sst [smem:[#allocation12_spill]] %s2248_s19  ;;  %p1940_p7 = por %p132_p5, %p81_p2 }
  0x17   : > { %p139_p8 = scmp.eq.s32.totalorder %s1280_s16, 0  ;;  %s68_s25 = ssub.s32 %s1801_s14, %s2248_s19 }
  0x18   : > { %p268_p9 = scmp.eq.s32.totalorder %s1280_s16, 3  ;;  %s70_s26 = sor.u32 %s69_s21, %s68_s25 }
  0x19   : > { %p123_p10 = scmp.eq.s32.totalorder %s68_s25, 0  ;;  %p71_p11 = scmp.eq.s32.totalorder %s70_s26, 0 }
  0x1a   : > { %p1946_p12 = por %p139_p8, %p138_p6  ;;  %p1959_p13 = por %p268_p9, %p80_p1 }
  0x1b   : > { %s1951_s8 = scalar_select %p123_p10, %s1777_s30, %s125_s23  }
  0x1c   : > { %s1954_s28 = scalar_select %p71_p11, %s1785_s10, %s73_s20  }
  0x1d   : > { %2218 = sst [smem:[#allocation13_spill]] %s1951_s8  ;;  %p273_p0 = scmp.ne.s32.totalorder %s1781_s9, %s1765_s27 }
  0x1e   : > { %2219 = sst [smem:[#allocation14_spill]] %s1954_s28  ;;  %p274_p2 = scmp.eq.s32.totalorder %s1281_s17, 3 }
  0x1f   : > { %s2220_s0 = scalar_select %p1959_p13, 1, 0 }
  0x20   : > { %p1965_p4 = por %p274_p2, %p273_p0  ;;  %p1283_p5 = scmp.ge.s32.totalorder %s1805_s15, 4 }
  0x22   : > { %s2221_s16 = scalar_select %p1965_p4, 1, 0 }
  0x23   : > { %290 = sbr.rel (%p1283_p5) target bundleno = 75 (0x4b), region = 16 }
  0x24   : > { %2222 = sst [smem:[#allocation15_spill]] %s2221_s16 }
  0x2a   : > { %304 = sbr.rel (!%p1929_p3) target bundleno = 49 (0x31), region = 24  ;;  %s306_s20 = sand.u32 (%p1929_p3), 1, %s1785_s10  }
  0x2b   : > { %s1285_s21 = sshll.u32 (%p1929_p3), %s1801_s14, 2  ;;  %s1284_s23 = sshll.u32 (%p1929_p3), %s306_s20, 4 }
  0x2c   : > { %s310_s25 = sadd.s32 (%p1929_p3), %s1797_s13, %s1285_s21  ;;  %s308_s8 = scalar_lea.vmem (%p1929_p3), [#allocation2], %s1284_s23 }
  0x2d   : > { %s1286_s26 = sshll.u32 (%p1929_p3), %s310_s25, 3 }
  0x2e   : > { %s312_s28 = scalar_lea.vmem (%p1929_p3), %s2194_s1, %s1286_s26 }
  0x2f   : > { %v342_v0 = vld [vmem:[%s312_s28] sm:$0xff] (%p1929_p3)  ;;  %v344_v1 = vld [vmem:[%s312_s28 + $0x10] sm:$0xff] (%p1929_p3) }
  0x30   : > { %343 = vst [vmem:[%s308_s8] sm:$0xff] (%p1929_p3), %v342_v0  ;;  %345 = vst [vmem:[%s308_s8 + $0x8] sm:$0xff] (%p1929_p3), %v344_v1 }
  0x31 PF: > { %s360_s22 = sand.u32 1, %s1777_s30   ;;  %s1318_s16 = sshll.u32 %s1801_s14, 11 }
  0x32   : > { %s1287_s10 = sshll.u32 %s360_s22, 7  ;;  %s1983_s21 = scalar_lea.hbm %s2196_s3, %s1318_s16 }
  0x33   : > { %s364_s19 = scalar_lea.vmem [#allocation3], %s1287_s10  ;;  %s1987_s8 = scalar_lea.sflag [#allocation4], %s360_s22 }
  0x34   : > { %s371_s28 = sshll.u32 %s364_s19, 4  ;;  %s1655_s23 = scalar_lea.hbm %s1983_s21, 2048  ;;  %s1985_s28 = int_to_ptr.vmem [resolvable:$true] %s371_s28 }
  0x35   : > { %p1656_p1 = scmp.ne.s32.totalorder %s1983_s21, %s1655_s23  ;;  %s1659_s27 = scalar_lea.hbm %s2196_s3, 4096 }
  0x36   : > { %p1660_p8 = scmp.lt.u32.totalorder %s1983_s21, %s2196_s3  ;;  %p1661_p9 = scmp.lt.u32.totalorder %s1659_s27, %s1655_s23 }
  0x37   : > { %p1657_p3 = pnand %p1656_p1, %p1940_p7  ;;  %p1663_p11 = scmp.lt.u32.totalorder %s1655_s23, %s1983_s21 }
  0x38   : > { %p1662_p10 = por %p1661_p9, %p1660_p8 }
  0x39   : > { %p1658_p6 = pneg %p1657_p3 }
  0x3a   : > { %p1664_p0 = por %p1663_p11, %p1662_p10 }
  0x3c   : > { %p1665_p2 = pnand %p1664_p0, %p1658_p6 }
  0x3e   : > { %1668 = shalt.err (!%p1665_p2)
}
  0x3f   : > { %s1669_s10 = scalar_lea.vmem %s1985_s28, 2048  ;;  %s1807_s22 = smov [#allocation3]  }
  0x40   : > { %p1670_p5 = scmp.ne.s32.totalorder %s1985_s28, %s1669_s10  ;;  %s1673_s20 = sshll.u32 %s1807_s22, 4  ;;  %s1674_s20 = int_to_ptr.vmem [resolvable:$false] %s1673_s20 }
  0x41   : > { %s1675_s19 = scalar_lea.vmem %s1674_s20, 4096  ;;  %p1676_p4 = scmp.lt.s32.totalorder %s1985_s28, %s1674_s20 }
  0x42   : > { %p1671_p1 = pnand %p1670_p5, %p1940_p7  ;;  %p1677_p13 = scmp.lt.s32.totalorder %s1675_s19, %s1669_s10 }
  0x44   : > { %p1672_p3 = pneg %p1671_p1  ;;  %p1678_p8 = por %p1677_p13, %p1676_p4 }
  0x46   : > { %p1679_p9 = pnand %p1678_p8, %p1672_p3 }
  0x48   : > { %1682 = shalt.err (!%p1679_p9)
}
  0x49   : > { %s1808_s23 = smov 128   ;;  %s1809_s25 = smov 8  }
  0x4a   : > { %1485 = dma.hbm_to_vmem [thread:$0]  (%p1940_p7), %s1983_s21, 2048, %s1985_s28, %s1987_s8, %s1808_s23, %s1808_s23, %s1809_s25  }
  0x4b PF: > { %p1290_p6 = scmp.ge.s32.totalorder %s1805_s15, 1  ;;  %p409_p10 = scmp.lt.s32.totalorder %s1805_s15, 5 }
  0x4d   : > { %p410_p11 = pnand %p1290_p6, %p409_p10 }
  0x4e   : > { %s2014_s26 = sand.u32 (!%p410_p11), 1, %s1781_s9   ;;  %s422_s27 = sand.u32 (!%p410_p11), 1, %s1773_s29  }
  0x4f   : > { %413 = sbr.rel (%p410_p11) target bundleno = 1103 (0x44f), region = 86  ;;  %s1291_s16 = sshll.u32 (!%p410_p11), %s2014_s26, 4 }
  0x50   : > { %s1292_s17 = sshll.u32 (!%p410_p11), %s422_s27, 7  ;;  %s2018_s10 = scalar_lea.vmem (!%p410_p11), [#allocation2], %s1291_s16 }
  0x51   : > { %s423_s24 = scalar_lea.sflag (!%p410_p11), [#allocation4], %s422_s27  ;;  %s2020_s21 = scalar_lea.vmem (!%p410_p11), [#allocation3], %s1292_s17 }
  0x56   : > { %1756 = dma.done.wait (%p1946_p12), %s423_s24, 2048  }
  0x57   : > { %1758 = vsyncadd (%p1946_p12), %s423_s24, 4294965248  ;;  %p494_p7 = scmp.lt.s32.totalorder %s1793_s12, 1  ;;  %v1810_v2 = vmov 0   ;;  %vm636_vm0 = vcmask 1043456   ;;  %vm637_vm1 = vcmask 1044480   ;;  %v1811_v8 = vmov 65535  }
  0x58   : > { %1587 = vset.pattern.permute.xlu1 %v1810_v2  ;;  %1586 = vset.pattern.permute.xlu0 %v1810_v2  ;;  %v638_v9 = vsel %vm636_vm0, 4294967295, %v1811_v8  ;;  %v527_v14 = vld [vmem:[%s2018_s10] sm:$0xff]  ;;  %v528_v15 = vld [vmem:[%s2018_s10 + $0x8] sm:$0x1]  ;;  %vm611_vm2 = vcmask 72704   ;;  %p496_p12 = scmp.lt.s32.totalorder %s1789_s11, 1 }
  0x59   : > { %s2028_s28 = scalar_select %p494_p7, %s1793_s12, 1  ;;  %v639_v10 = vsel %vm637_vm1, %v638_v9, 0  ;;  %v531_v31 = vld [vmem:[%s2020_s21] sm:$0xff]  ;;  %v532_v32 = vld [vmem:[%s2020_s21 + $0x8] sm:$0xff]  ;;  %v533_v33 = vld [vmem:[%s2020_s21 + $0x10] sm:$0xff] }
  0x5a   : > { %v1437_v34 = vpack.c.bf16 %v532_v32, %v531_v31  ;;  %v534_v35 = vld [vmem:[%s2020_s21 + $0x18] sm:$0xff]  ;;  %v535_v37 = vld [vmem:[%s2020_s21 + $0x20] sm:$0xff]  ;;  %v536_v38 = vld [vmem:[%s2020_s21 + $0x28] sm:$0xff]  ;;  %s497_s25 = scalar_select %p496_p12, %s1789_s11, 1 }
  0x5b   : > { %s1320_s8 = sshll.u32 %s2028_s28, 4  ;;  %s1319_s27 = sshll.u32 %s2028_s28, 3  ;;  %v1441_v36 = vpack.c.bf16 %v534_v35, %v533_v33  ;;  %v1445_v39 = vpack.c.bf16 %v536_v38, %v535_v37  ;;  %v537_v40 = vld [vmem:[%s2020_s21 + $0x30] sm:$0xff]  ;;  %v538_v41 = vld [vmem:[%s2020_s21 + $0x38] sm:$0xff]  ;;  %v539_v43 = vld [vmem:[%s2020_s21 + $0x40] sm:$0xff] }
  0x5c   : > { %s524_s19 = scalar_lea.vmem %s2200_s7, %s1320_s8  ;;  %s519_s18 = scalar_lea.vmem %s2199_s6, %s1320_s8  ;;  %1469 = vmatprep.subr.bf16.mxu1 %v1437_v34  ;;  %v1449_v42 = vpack.c.bf16 %v538_v41, %v537_v40  ;;  %v540_v44 = vld [vmem:[%s2020_s21 + $0x48] sm:$0xff]  ;;  %v541_v46 = vld [vmem:[%s2020_s21 + $0x50] sm:$0xff]  ;;  %v542_v47 = vld [vmem:[%s2020_s21 + $0x58] sm:$0xff] }
  0x5d   : > { %v561_v3 = vld [vmem:[%s524_s19] sm:$0xff]  ;;  %v562_v5 = vld [vmem:[%s524_s19 + $0x8] sm:$0x1]  ;;  %s506_s24 = scalar_lea.vmem %s2195_s2, %s1319_s27  ;;  %1477 = vmatpush3.bf16.xpose.msra.mxu1 %v1437_v34  ;;  %v1453_v45 = vpack.c.bf16 %v540_v44, %v539_v43  ;;  %v1457_v48 = vpack.c.bf16 %v542_v47, %v541_v46  ;;  %v545_v0 = vld [vmem:[%s2020_s21 + $0x70] sm:$0xff]  ;;  %s1298_s10 = sshll.u32 %s2028_s28, 2 }
  0x5e   : > { %v547_v4 = vld [vmem:[%s519_s18] sm:$0xff]  ;;  %565 = vperm.xlu1 %1587, %v561_v3   ;;  %v548_v6 = vld [vmem:[%s519_s18 + $0x8] sm:$0x1]  ;;  %1470 = vmatprep.subr.bf16.mxu1 %v1441_v36  ;;  %v546_v1 = vld [vmem:[%s2020_s21 + $0x78] sm:$0xff]  ;;  %s510_s22 = scalar_lea.vmem %s2197_s4, %s1298_s10  ;;  %s514_s23 = scalar_lea.vmem %s2198_s5, %s1298_s10 }
  0x5f   : > { %551 = vperm.xlu0 %1586, %v547_v4   ;;  %v1588_v7 = vld [vmem:[%s506_s24] sm:$0x1f]   ;;  %v544_v58 = vld [vmem:[%s2020_s21 + $0x68] sm:$0xff]  ;;  %v1465_v2 = vpack.c.bf16 %v546_v1, %v545_v0  ;;  %s1294_s18 = sshll.u32 %s2028_s28, 1  ;;  %s2223_s10 = sld [smem:[#allocation16_spill]] }
  0x60   : > { %v641_v11 = vand.u32 %v1588_v7, %v639_v10  ;;  %v543_v57 = vld [vmem:[%s2020_s21 + $0x60] sm:$0xff]  ;;  %s499_s27 = sadd.s32 %s1294_s18, %s497_s25  ;;  %s1293_s8 = sshll.u32 %s2014_s26, 2 }
  0x61   : > { %v1461_v59 = vpack.c.bf16 %v544_v58, %v543_v57  ;;  %s1295_s16 = sshll.u32 %s499_s27, 2  ;;  %s493_s19 = scalar_lea.vmem [#allocation6], %s1293_s8 }
  0x62   : > { %570 = vperm.xlu1 %1587, %v562_v5   ;;  %1363 = vmatprep.subr.bf16.mxu0 %v641_v11  ;;  %s2224_s18 = sld [smem:[#allocation17_spill]]  ;;  %p2225_p4 = scmp.ne.s32.totalorder %s2220_s0, 0 }
  0x63   : > { %556 = vperm.xlu0 %1586, %v548_v6   ;;  %1364 = vmatpush3.bf16.msra.mxu0 %v641_v11  ;;  %s1812_s17 = smov [#allocation6]  }
  0x64   : > { %1438 = vmatprep.subr.bf16.mxu0 %v1437_v34  ;;  %s1687_s24 = sshll.u32 %s1812_s17, 4  ;;  %s1688_s24 = int_to_ptr.vmem [resolvable:$false] %s1687_s24 }
  0x65   : > { %1478 = vmatpush3.bf16.xpose.msra.mxu1 %v1441_v36  ;;  %s501_s21 = scalar_lea.vmem %s2223_s10, %s1295_s16  ;;  %s1689_s10 = scalar_lea.vmem %s1688_s24, 128 }
  0x66   : > { %1471 = vmatprep.subr.bf16.mxu1 %v1445_v39 }
  0x6d   : > { %1479 = vmatpush3.bf16.xpose.msra.mxu1 %v1445_v39 }
  0x6e   : > { %1472 = vmatprep.subr.bf16.mxu1 %v1449_v42 }
  0x75   : > { %1480 = vmatpush3.bf16.xpose.msra.mxu1 %v1449_v42 }
  0x76   : > { %1473 = vmatprep.subr.bf16.mxu1 %v1453_v45 }
  0x7d   : > { %1481 = vmatpush3.bf16.xpose.msra.mxu1 %v1453_v45 }
  0x7e   : > { %1474 = vmatprep.subr.bf16.mxu1 %v1457_v48 }
  0x85   : > { %1482 = vmatpush3.bf16.xpose.msra.mxu1 %v1457_v48 }
  0x86   : > { %1475 = vmatprep.subr.bf16.mxu1 %v1461_v59 }
  0x8d   : > { %1483 = vmatpush3.bf16.xpose.msra.mxu1 %v1461_v59 }
  0x8e   : > { %1476 = vmatprep.subr.bf16.mxu1 %v1465_v2 }
  0x95   : > { %1484 = vmatpush3.bf16.xpose.msra.mxu1 %v1465_v2 }
  0xdd   : > { %v566_v12 = vpop.permute.xlu1 %565 }
  0xde   : > { %v552_v13 = vpop.permute.xlu0 %551 }
  0xdf   : > { %v559_v16 = vmul.f32 %v552_v13, %v527_v14 }
  0xe1   : > { %v571_v19 = vpop.permute.xlu1 %570  ;;  %v573_v20 = vadd.f32 %v566_v12, %v559_v16 }
  0xe2   : > { %v557_v17 = vpop.permute.xlu0 %556 }
  0xe3   : > { %v560_v18 = vmul.f32 %v557_v17, %v528_v15 }
  0xe5   : > { %v574_v21 = vadd.f32 %v571_v19, %v560_v18 }
  0xe7   : > { %v589_v22 = vpack.c.bf16 %v574_v21, %v573_v20 }
  0xe9   : > { %590 = vxpose.xlu0.c.b16.start.end [1/1] (short) %v589_v22, 128 }
 0x14f   : > { %v598_v23 = vpop.trf.xlu0 }
 0x150   : > { %1365 = vmatprep.mubr.msk.bf16.mxu0 %vm611_vm2, %v598_v23 }
 0x153   : > { %v599_v24 = vpop.trf.xlu0 }
 0x154   : > { %1366 = vmatmul.mubr.msk.bf16.vlgmr.msra.gmra.mrb[0].mxu0 %vm611_vm2, %v599_v24 }
 0x155   : > { %1440 = vmatpush3.bf16.xpose.msra.mxu0 %v1437_v34 }
 0x156   : > { %1442 = vmatprep.subr.bf16.mxu0 %v1441_v36 }
 0x157   : > { %v600_v25 = vpop.trf.xlu0 }
 0x158   : > { %1369 = vmatprep.mubr.msk.bf16.mxu0 %vm611_vm2, %v600_v25 }
 0x15b   : > { %v601_v26 = vpop.trf.xlu0 }
 0x15c   : > { %1370 = vmatmul.mubr.msk.bf16.gmra.mrb[4].mxu0 %vm611_vm2, %v601_v26 }
 0x15d   : > { %1444 = vmatpush3.bf16.xpose.msra.mxu0 %v1441_v36 }
 0x15e   : > { %1446 = vmatprep.subr.bf16.mxu0 %v1445_v39 }
 0x15f   : > { %v602_v27 = vpop.trf.xlu0 }
 0x160   : > { %1373 = vmatprep.mubr.msk.bf16.mxu0 %vm611_vm2, %v602_v27 }
 0x163   : > { %v603_v28 = vpop.trf.xlu0 }
 0x164   : > { %1374 = vmatmul.mubr.msk.bf16.gmra.mrb[8].mxu0 %vm611_vm2, %v603_v28 }
 0x165   : > { %1448 = vmatpush3.bf16.xpose.msra.mxu0 %v1445_v39 }
 0x166   : > { %1450 = vmatprep.subr.bf16.mxu0 %v1449_v42 }
 0x167   : > { %v604_v29 = vpop.trf.xlu0 }
 0x168   : > { %1377 = vmatprep.mubr.msk.bf16.mxu0 %vm611_vm2, %v604_v29 }
 0x16b   : > { %v605_v30 = vpop.trf.xlu0 }
 0x16c   : > { %1378 = vmatmul.mubr.msk.bf16.gmra.mrb[12].mxu0 %vm611_vm2, %v605_v30 }
 0x16d   : > { %1452 = vmatpush3.bf16.xpose.msra.mxu0 %v1449_v42 }
 0x16e   : > { %1454 = vmatprep.subr.bf16.mxu0 %v1453_v45 }
 0x175   : > { %1456 = vmatpush3.bf16.xpose.msra.mxu0 %v1453_v45 }
 0x176   : > { %1458 = vmatprep.subr.bf16.mxu0 %v1457_v48 }
 0x17d   : > { %1460 = vmatpush3.bf16.xpose.msra.mxu0 %v1457_v48 }
 0x17e   : > { %1462 = vmatprep.subr.bf16.mxu0 %v1461_v59 }
 0x185   : > { %1464 = vmatpush3.bf16.xpose.msra.mxu0 %v1461_v59 }
 0x186   : > { %1466 = vmatprep.subr.bf16.mxu0 %v1465_v2 }
 0x18d   : > { %1468 = vmatpush3.bf16.xpose.msra.mxu0 %v1465_v2 }
 0x227   : > { %v1367_v49 = vpop.f32.mrb[0].mxu0 }
 0x228   : > { %v677_v50 = vpop.f32.mrb[1].mxu0 }
 0x229   : > { %740 = vmax.xlane.f32.xlu1 %v677_v50  ;;  %v1368_v51 = vpop.f32.mrb[2].mxu0 }
 0x22a   : > { %v680_v52 = vpop.f32.mrb[3].mxu0 }
 0x22b   : > { %742 = vmax.xlane.f32.xlu0 %v680_v52 }
 0x22d   : > { %744 = vmax.xlane.f32.xlu1 %v1367_v49 }
 0x22f   : > { %v1371_v53 = vpop.f32.mrb[4].mxu0 }
 0x230   : > { %v2063_v54 = vpop.f32.mrb[5].mxu0 }
 0x231   : > { %746 = vmax.xlane.f32.xlu1 %v1368_v51  ;;  %v2065_v55 = vpop.f32.mrb[6].mxu0 }
 0x232   : > { %v2067_v56 = vpop.f32.mrb[7].mxu0 }
 0x235   : > { %752 = vmax.xlane.f32.xlu1 %v1371_v53 }
 0x237   : > { %v2071_v60 = vpop.f32.mrb[8].mxu0 }
 0x238   : > { %v2073_v61 = vpop.f32.mrb[9].mxu0 }
 0x239   : > { %748 = vmax.xlane.f32.xlu1 %v2063_v54  ;;  %v2076_v62 = vpop.f32.mrb[10].mxu0 }
 0x23a   : > { %762 = vmax.xlane.f32.xlu0 %v2076_v62  ;;  %v2079_v63 = vpop.f32.mrb[11].mxu0 }
 0x23d   : > { %754 = vmax.xlane.f32.xlu1 %v2065_v55 }
 0x23f   : > { %v2084_v3 = vpop.f32.mrb[12].mxu0 }
 0x240   : > { %v2086_v4 = vpop.f32.mrb[13].mxu0 }
 0x241   : > { %750 = vmax.xlane.f32.xlu1 %v2067_v56  ;;  %v2089_v5 = vpop.f32.mrb[14].mxu0 }
 0x242   : > { %v2091_v6 = vpop.f32.mrb[15].mxu0 }
 0x243   : > { %766 = vmax.xlane.f32.xlu0 %v2091_v6 }
 0x245   : > { %756 = vmax.xlane.f32.xlu1 %v2073_v61 }
 0x247   : > { %770 = vmax.xlane.f32.xlu0 %v2089_v5 }
 0x249   : > { %758 = vmax.xlane.f32.xlu1 %v2079_v63 }
 0x24d   : > { %760 = vmax.xlane.f32.xlu1 %v2071_v60 }
 0x251   : > { %764 = vmax.xlane.f32.xlu1 %v2086_v4 }
 0x255   : > { %768 = vmax.xlane.f32.xlu1 %v2084_v3 }
 0x2b6   : > { %v741_v7 = vpop.xlane.xlu1 %740 }
 0x2b7   : > { %v772_v8 = vsub.f32 %v677_v50, %v741_v7  ;;  %v575_v7 = vld [vmem:[%s510_s22] sm:$0xf]  ;;  %s1314_s22 = sshll.u32 %s1793_s12, 1 }
 0x2b8   : > { %v743_v9 = vpop.xlane.xlu0 %742  ;;  %s1095_s28 = sadd.s32 %s1789_s11, %s1314_s22  ;;  %s1084_s11 = scalar_lea.sflag [#allocation5], %s2014_s26 }
 0x2b9   : > { %v788_v10 = vmul.f32 1.442695, %v772_v8  ;;  %v773_v11 = vsub.f32 %v680_v52, %v743_v9  ;;  %v582_v8 = vld [vmem:[%s514_s23] sm:$0xf]  ;;  %s1315_s20 = sshll.u32 %s1095_s28, 6  ;;  %s1099_s23 = sshll.u32 %s493_s19, 4  ;;  %s2132_s23 = int_to_ptr.vmem [resolvable:$true] %s1099_s23 }
 0x2ba   : > { %v745_v12 = vpop.xlane.xlu1 %744  ;;  %s2130_s27 = scalar_lea.hbm %s2224_s18, %s1315_s20  ;;  %s1683_s16 = scalar_lea.vmem %s2132_s23, 64 }
 0x2bb   : > { %1589 = vpow2.f32 %v788_v10  ;;  %v790_v13 = vmul.f32 1.442695, %v773_v11  ;;  %v774_v14 = vsub.f32 %v1367_v49, %v745_v12  ;;  %p1684_p13 = scmp.ne.s32.totalorder %s2132_s23, %s1683_s16  ;;  %p1690_p5 = scmp.lt.s32.totalorder %s2132_s23, %s1688_s24 }
 0x2bc   : > { %p1691_p1 = scmp.lt.s32.totalorder %s1689_s10, %s1683_s16 }
 0x2bd   : > { %1591 = vpow2.f32 %v790_v13  ;;  %v792_v15 = vmul.f32 1.442695, %v774_v14  ;;  %p1685_p0 = pnand %p1684_p13, %p2225_p4 }
 0x2be   : > { %v747_v16 = vpop.xlane.xlu1 %746  ;;  %p1692_p3 = por %p1691_p1, %p1690_p5 }
 0x2bf   : > { %1593 = vpow2.f32 %v792_v15  ;;  %v775_v17 = vsub.f32 %v1368_v51, %v747_v16  ;;  %p1686_p2 = pneg %p1685_p0 }
 0x2c1   : > { %v794_v18 = vmul.f32 1.442695, %v775_v17  ;;  %p1693_p8 = pnand %p1692_p3, %p1686_p2 }
 0x2c2   : > { %v753_v19 = vpop.xlane.xlu1 %752 }
 0x2c3   : > { %1595 = vpow2.f32 %v794_v18  ;;  %v778_v20 = vsub.f32 %v1371_v53, %v753_v19 }
 0x2c5   : > { %v1590_v21 = vpop.eup %1589  ;;  %v800_v22 = vmul.f32 1.442695, %v778_v20 }
 0x2c6   : > { %v749_v23 = vpop.xlane.xlu1 %748  ;;  %1413 = vmatprep.mubr.f32.mxu0 %v1590_v21 }
 0x2c7   : > { %v1592_v24 = vpop.eup %1591  ;;  %1597 = vpow2.f32 %v800_v22  ;;  %v776_v25 = vsub.f32 %v2063_v54, %v749_v23  ;;  %v763_v37 = vpop.xlane.xlu0 %762 }
 0x2c8   : > { %822 = vadd.xlane.f32.xlu0 %v1592_v24  ;;  %1414 = vmatmul.mubr.f32.vlgmr.msra.gmra.mrb[16].mxu0 %v1592_v24  ;;  %v783_v44 = vsub.f32 %v2076_v62, %v763_v37 }
 0x2c9   : > { %v1594_v26 = vpop.eup %1593  ;;  %v796_v27 = vmul.f32 1.442695, %v776_v25 }
 0x2ca   : > { %v755_v28 = vpop.xlane.xlu1 %754  ;;  %824 = vadd.xlane.f32.xlu1 %v1594_v26  ;;  %1416 = vmatprep.mubr.f32.mxu0 %v1594_v26  ;;  %v810_v49 = vmul.f32 1.442695, %v783_v44 }
 0x2cb   : > { %1599 = vpow2.f32 %v796_v27  ;;  %v779_v29 = vsub.f32 %v2065_v55, %v755_v28 }
 0x2cd   : > { %v1596_v30 = vpop.eup %1595  ;;  %v802_v31 = vmul.f32 1.442695, %v779_v29 }
 0x2ce   : > { %v751_v32 = vpop.xlane.xlu1 %750  ;;  %820 = vadd.xlane.f32.xlu1 %v1590_v21  ;;  %826 = vadd.xlane.f32.xlu0 %v1596_v30 }
 0x2cf   : > { %1601 = vpow2.f32 %v802_v31  ;;  %v777_v33 = vsub.f32 %v2067_v56, %v751_v32  ;;  %1417 = vmatmul.mubr.f32.gmra.mrb[18].mxu0 %v1596_v30 }
 0x2d0   : > { %v767_v42 = vpop.xlane.xlu0 %766 }
 0x2d1   : > { %v1598_v34 = vpop.eup %1597  ;;  %v798_v35 = vmul.f32 1.442695, %v777_v33  ;;  %v785_v50 = vsub.f32 %v2091_v6, %v767_v42 }
 0x2d2   : > { %1422 = vmatprep.mubr.f32.mxu1 %v1598_v34  ;;  %v757_v36 = vpop.xlane.xlu1 %756  ;;  %832 = vadd.xlane.f32.xlu1 %v1598_v34 }
 0x2d3   : > { %1603 = vpow2.f32 %v798_v35  ;;  %v780_v38 = vsub.f32 %v2073_v61, %v757_v36  ;;  %v814_v56 = vmul.f32 1.442695, %v785_v50 }
 0x2d4   : > { %v771_v52 = vpop.xlane.xlu0 %770 }
 0x2d5   : > { %v1600_v39 = vpop.eup %1599  ;;  %v804_v40 = vmul.f32 1.442695, %v780_v38  ;;  %v787_v57 = vsub.f32 %v2089_v5, %v771_v52 }
 0x2d6   : > { %v759_v41 = vpop.xlane.xlu1 %758  ;;  %828 = vadd.xlane.f32.xlu1 %v1600_v39  ;;  %1419 = vmatprep.mubr.f32.mxu0 %v1600_v39 }
 0x2d7   : > { %1605 = vpow2.f32 %v804_v40  ;;  %v781_v43 = vsub.f32 %v2079_v63, %v759_v41  ;;  %v818_v62 = vmul.f32 1.442695, %v787_v57 }
 0x2d9   : > { %v1602_v45 = vpop.eup %1601  ;;  %v806_v46 = vmul.f32 1.442695, %v781_v43 }
 0x2da   : > { %1423 = vmatmul.mubr.f32.vlgmr.msra.gmra.mrb[0].mxu1 %v1602_v45  ;;  %v761_v47 = vpop.xlane.xlu1 %760 }
 0x2db   : > { %1607 = vpow2.f32 %v806_v46  ;;  %v782_v48 = vsub.f32 %v2071_v60, %v761_v47 }
 0x2dd   : > { %v1604_v51 = vpop.eup %1603  ;;  %v808_v53 = vmul.f32 1.442695, %v782_v48 }
 0x2de   : > { %v765_v54 = vpop.xlane.xlu1 %764  ;;  %830 = vadd.xlane.f32.xlu0 %v1604_v51  ;;  %1420 = vmatmul.mubr.f32.gmra.mrb[20].mxu0 %v1604_v51 }
 0x2df   : > { %1609 = vpow2.f32 %v808_v53  ;;  %v784_v55 = vsub.f32 %v2086_v4, %v765_v54 }
 0x2e0   : > { %1611 = vpow2.f32 %v810_v49 }
 0x2e1   : > { %v1606_v58 = vpop.eup %1605  ;;  %v812_v59 = vmul.f32 1.442695, %v784_v55 }
 0x2e2   : > { %1425 = vmatprep.mubr.f32.mxu1 %v1606_v58  ;;  %v769_v60 = vpop.xlane.xlu1 %768  ;;  %834 = vadd.xlane.f32.xlu0 %v1602_v45 }
 0x2e3   : > { %1613 = vpow2.f32 %v812_v59  ;;  %v786_v61 = vsub.f32 %v2084_v3, %v769_v60 }
 0x2e4   : > { %1615 = vpow2.f32 %v814_v56 }
 0x2e5   : > { %v1608_v63 = vpop.eup %1607  ;;  %v816_v0 = vmul.f32 1.442695, %v786_v61 }
 0x2e6   : > { %1426 = vmatmul.mubr.f32.gmra.mrb[2].mxu1 %v1608_v63  ;;  %838 = vadd.xlane.f32.xlu0 %v1608_v63 }
 0x2e7   : > { %1617 = vpow2.f32 %v816_v0 }
 0x2e8   : > { %1619 = vpow2.f32 %v818_v62 }
 0x2e9   : > { %v1610_v1 = vpop.eup %1609 }
 0x2ea   : > { %v1612_v2 = vpop.eup %1611  ;;  %1428 = vmatprep.mubr.f32.mxu1 %v1610_v1  ;;  %840 = vadd.xlane.f32.xlu1 %v1610_v1 }
 0x2eb   : > { %842 = vadd.xlane.f32.xlu0 %v1612_v2  ;;  %1429 = vmatmul.mubr.f32.gmra.mrb[4].mxu1 %v1612_v2 }
 0x2ed   : > { %v1614_v4 = vpop.eup %1613 }
 0x2ee   : > { %v1616_v5 = vpop.eup %1615  ;;  %836 = vadd.xlane.f32.xlu1 %v1606_v58  ;;  %1431 = vmatprep.mubr.f32.mxu1 %v1614_v4 }
 0x2ef   : > { %846 = vadd.xlane.f32.xlu0 %v1616_v5  ;;  %1432 = vmatmul.mubr.f32.gmra.mrb[6].mxu1 %v1616_v5 }
 0x2f1   : > { %v1618_v3 = vpop.eup %1617 }
 0x2f2   : > { %v1620_v6 = vpop.eup %1619  ;;  %848 = vadd.xlane.f32.xlu1 %v1618_v3  ;;  %1434 = vmatprep.mubr.f32.mxu1 %v1618_v3 }
 0x2f3   : > { %850 = vadd.xlane.f32.xlu0 %v1620_v6  ;;  %1435 = vmatmul.mubr.f32.gmra.mrb[8].mxu1 %v1620_v6 }
 0x2f6   : > { %844 = vadd.xlane.f32.xlu1 %v1614_v4 }
 0x307   : > { %578 = vperm.xlu1 %1587, %v575_v7  }
 0x309   : > { %585 = vperm.xlu0 %1586, %v582_v8  }
 0x355   : > { %v823_v11 = vpop.xlane.xlu0 %822 }
 0x357   : > { %v825_v9 = vpop.xlane.xlu1 %824 }
 0x35b   : > { %v821_v10 = vpop.xlane.xlu1 %820  ;;  %v827_v12 = vpop.xlane.xlu0 %826 }
 0x35c   : > { %1621 = vrcp.f32 %v821_v10 }
 0x35d   : > { %1623 = vrcp.f32 %v823_v11 }
 0x35e   : > { %1625 = vrcp.f32 %v825_v9 }
 0x35f   : > { %1627 = vrcp.f32 %v827_v12  ;;  %v833_v17 = vpop.xlane.xlu1 %832 }
 0x363   : > { %v829_v23 = vpop.xlane.xlu1 %828 }
 0x364   : > { %1629 = vrcp.f32 %v829_v23 }
 0x366   : > { %v1622_v14 = vpop.eup %1621 }
 0x367   : > { %v1624_v18 = vpop.eup %1623 }
 0x368   : > { %v1626_v22 = vpop.eup %1625 }
 0x369   : > { %v1628_v25 = vpop.eup %1627 }
 0x36b   : > { %v831_v26 = vpop.xlane.xlu0 %830 }
 0x36c   : > { %1631 = vrcp.f32 %v831_v26 }
 0x36d   : > { %1633 = vrcp.f32 %v833_v17 }
 0x36e   : > { %v1630_v33 = vpop.eup %1629 }
 0x36f   : > { %v835_v31 = vpop.xlane.xlu0 %834 }
 0x370   : > { %1635 = vrcp.f32 %v835_v31 }
 0x373   : > { %v839_v39 = vpop.xlane.xlu0 %838 }
 0x376   : > { %v1632_v37 = vpop.eup %1631 }
 0x377   : > { %v841_v30 = vpop.xlane.xlu1 %840  ;;  %v1634_v41 = vpop.eup %1633 }
 0x378   : > { %v843_v49 = vpop.xlane.xlu0 %842 }
 0x37a   : > { %v1636_v44 = vpop.eup %1635 }
 0x37b   : > { %v837_v36 = vpop.xlane.xlu1 %836 }
 0x37c   : > { %1637 = vrcp.f32 %v837_v36  ;;  %v847_v59 = vpop.xlane.xlu0 %846 }
 0x37d   : > { %1639 = vrcp.f32 %v839_v39 }
 0x37e   : > { %1641 = vrcp.f32 %v841_v30 }
 0x37f   : > { %v849_v46 = vpop.xlane.xlu1 %848  ;;  %1643 = vrcp.f32 %v843_v49 }
 0x380   : > { %v851_v0 = vpop.xlane.xlu0 %850 }
 0x383   : > { %v845_v54 = vpop.xlane.xlu1 %844 }
 0x384   : > { %1645 = vrcp.f32 %v845_v54 }
 0x385   : > { %1647 = vrcp.f32 %v847_v59 }
 0x386   : > { %v1638_v50 = vpop.eup %1637  ;;  %1649 = vrcp.f32 %v849_v46 }
 0x387   : > { %v1640_v55 = vpop.eup %1639  ;;  %1651 = vrcp.f32 %v851_v0  ;;  %v579_v9 = vpop.permute.xlu1 %578 }
 0x388   : > { %v1642_v60 = vpop.eup %1641  ;;  %v586_v17 = vpop.permute.xlu0 %585 }
 0x389   : > { %v1644_v62 = vpop.eup %1643 }
 0x38e   : > { %v1646_v1 = vpop.eup %1645 }
 0x38f   : > { %v1648_v4 = vpop.eup %1647 }
 0x390   : > { %v1650_v3 = vpop.eup %1649 }
 0x391   : > { %v1652_v7 = vpop.eup %1651 }
 0x39b   : > { %v1415_v13 = vpop.f32.mrb[16].mxu0 }
 0x39c   : > { %v918_v15 = vpop.f32.mrb[17].mxu0  ;;  %v1014_v19 = vmul.f32 %v1624_v18, %v1415_v13 }
 0x39d   : > { %v1013_v16 = vmul.f32 %v1622_v14, %v918_v15  ;;  %v526_v15 = vld [vmem:[%s501_s21] sm:$0xf] }
 0x39f   : > { %1029 = vxpose.xlu1.b32.start [1/16] (narrow) %v1013_v16, 8  ;;  %v581_v16 = vmul.f32 %v579_v9, %v526_v15 }
 0x3a1   : > { %v588_v18 = vadd.f32 %v586_v17, %v581_v16 }
 0x3a2   : > { %v1418_v20 = vpop.f32.mrb[18].mxu0 }
 0x3a3   : > { %v928_v21 = vpop.f32.mrb[19].mxu0  ;;  %1030 = vxpose.xlu1.b32.cont [2/16] (narrow) %v1014_v19, 8  ;;  %v1016_v27 = vmul.f32 %v1628_v25, %v1418_v20 }
 0x3a4   : > { %v1015_v24 = vmul.f32 %v1626_v22, %v928_v21  ;;  %v1075_v22 = vrot.slane %v588_v18, 4 }
 0x3a7   : > { %1031 = vxpose.xlu1.b32.cont [3/16] (narrow) %v1015_v24, 8 }
 0x3ab   : > { %1032 = vxpose.xlu1.b32.cont [4/16] (narrow) %v1016_v27, 8 }
 0x3ad   : > { %v1424_v28 = vpop.f32.mrb[0].mxu1 }
 0x3ae   : > { %v948_v29 = vpop.f32.mrb[1].mxu1  ;;  %v1020_v47 = vmul.f32 %v1636_v44, %v1424_v28 }
 0x3af   : > { %v1019_v43 = vmul.f32 %v1634_v41, %v948_v29 }
 0x3b1   : > { %v1421_v32 = vpop.f32.mrb[20].mxu0 }
 0x3b2   : > { %v938_v34 = vpop.f32.mrb[21].mxu0  ;;  %v1018_v38 = vmul.f32 %v1632_v37, %v1421_v32 }
 0x3b3   : > { %v1017_v35 = vmul.f32 %v1630_v33, %v938_v34 }
 0x3b5   : > { %1033 = vxpose.xlu1.b32.cont [5/16] (narrow) %v1017_v35, 8 }
 0x3b9   : > { %v1427_v40 = vpop.f32.mrb[2].mxu1  ;;  %1034 = vxpose.xlu1.b32.cont [6/16] (narrow) %v1018_v38, 8 }
 0x3ba   : > { %v958_v42 = vpop.f32.mrb[3].mxu1  ;;  %v1022_v57 = vmul.f32 %v1640_v55, %v1427_v40 }
 0x3bb   : > { %v1021_v52 = vmul.f32 %v1638_v50, %v958_v42 }
 0x3bd   : > { %1035 = vxpose.xlu1.b32.cont [7/16] (narrow) %v1019_v43, 8 }
 0x3be   : > { %v1430_v45 = vpop.f32.mrb[4].mxu1 }
 0x3bf   : > { %v968_v48 = vpop.f32.mrb[5].mxu1  ;;  %v1024_v63 = vmul.f32 %v1644_v62, %v1430_v45 }
 0x3c0   : > { %v1023_v61 = vmul.f32 %v1642_v60, %v968_v48 }
 0x3c1   : > { %1036 = vxpose.xlu1.b32.cont [8/16] (narrow) %v1020_v47, 8 }
 0x3c2   : > { %v1433_v51 = vpop.f32.mrb[6].mxu1 }
 0x3c3   : > { %v978_v53 = vpop.f32.mrb[7].mxu1  ;;  %v1026_v5 = vmul.f32 %v1648_v4, %v1433_v51 }
 0x3c4   : > { %v1025_v2 = vmul.f32 %v1646_v1, %v978_v53 }
 0x3c5   : > { %1037 = vxpose.xlu1.b32.cont [9/16] (narrow) %v1021_v52, 8 }
 0x3c6   : > { %v1436_v56 = vpop.f32.mrb[8].mxu1 }
 0x3c7   : > { %v988_v58 = vpop.f32.mrb[9].mxu1  ;;  %v1028_v8 = vmul.f32 %v1652_v7, %v1436_v56 }
 0x3c8   : > { %v1027_v6 = vmul.f32 %v1650_v3, %v988_v58 }
 0x3c9   : > { %1038 = vxpose.xlu1.b32.cont [10/16] (narrow) %v1022_v57, 8 }
 0x3cd   : > { %1039 = vxpose.xlu1.b32.cont [11/16] (narrow) %v1023_v61, 8 }
 0x3d1   : > { %1040 = vxpose.xlu1.b32.cont [12/16] (narrow) %v1024_v63, 8 }
 0x3d5   : > { %1041 = vxpose.xlu1.b32.cont [13/16] (narrow) %v1025_v2, 8 }
 0x3d9   : > { %1042 = vxpose.xlu1.b32.cont [14/16] (narrow) %v1026_v5, 8 }
 0x3dd   : > { %1043 = vxpose.xlu1.b32.cont [15/16] (narrow) %v1027_v6, 8 }
 0x3e1   : > { %1044 = vxpose.xlu1.b32.end [16/16] (narrow) %v1028_v8, 8 }
 0x425   : > { %v1045_v10 = vpop.trf.xlu1 }
 0x426   : > { %v1061_v11 = vmul.f32 %v1045_v10, %v1045_v10  ;;  %v1079_v26 = vrot.slane %v1045_v10, 4 }
 0x428   : > { %v1063_v12 = vrot.slane %v1061_v11, 4 }
 0x42a   : > { %v1065_v13 = vsub.f32 %v1045_v10, %v1063_v12 }
 0x42c   : > { %v1066_v14 = vmax.f32 %v1065_v13, 0.0 }
 0x42e   : > { %1653 = vrsqrt.f32 %v1066_v14  ;;  %vm1069_vm3 = vcmp.eq.f32.partialorder %v1066_v14, inf  ;;  %v1072_v21 = vand.u32 2147483648, %v1066_v14  ;;  %vm1071_vm4 = vcmp.eq.f32.partialorder %v1066_v14, 0.0 }
 0x438   : > { %v1654_v19 = vpop.eup %1653 }
 0x439   : > { %v1068_v20 = vmul.f32 %v1654_v19, %v1066_v14 }
 0x43b   : > { %v1070_v23 = vsel %vm1069_vm3, %v1066_v14, %v1068_v20 }
 0x43c   : > { %v1073_v24 = vsel %vm1071_vm4, %v1072_v21, %v1070_v23 }
 0x43d   : > { %v1077_v25 = vmul.f32 %v1075_v22, %v1073_v24 }
 0x43f   : > { %v1081_v27 = vadd.f32 %v1079_v26, %v1077_v25 }
 0x441   : > { %1082 = vst [vmem:[%s493_s19 - $0x4] sm:$0xf0] %v1081_v27 }
 0x442   : > { %1696 = shalt.err (!%p1693_p8)
}
 0x443   : > { %s1697_s26 = scalar_lea.hbm %s2130_s27, 64  ;;  %s1701_s22 = scalar_lea.hbm %s2224_s18, 256 }
 0x444   : > { %p1698_p9 = scmp.ne.s32.totalorder %s2130_s27, %s1697_s26  ;;  %p1702_p11 = scmp.lt.u32.totalorder %s2130_s27, %s2224_s18 }
 0x445   : > { %p1703_p7 = scmp.lt.u32.totalorder %s1701_s22, %s1697_s26  ;;  %p1705_p13 = scmp.lt.u32.totalorder %s1697_s26, %s2130_s27 }
 0x446   : > { %p1699_p6 = pnand %p1698_p9, %p2225_p4 }
 0x447   : > { %p1704_p12 = por %p1703_p7, %p1702_p11 }
 0x448   : > { %p1700_p10 = pneg %p1699_p6 }
 0x449   : > { %p1706_p0 = por %p1705_p13, %p1704_p12 }
 0x44b   : > { %p1707_p2 = pnand %p1706_p0, %p1700_p10 }
 0x44d   : > { %1710 = shalt.err (!%p1707_p2)
}
 0x44e   : > { %1487 = dma.vmem_to_hbm [thread:$0]  (%p2225_p4), %s2132_s23, 64, %s2130_s27, %s1084_s11  }
 0x44f PF: > { %s2226_s19 = sld [smem:[#allocation9_spill]]  ;;  %s2227_s25 = sld [smem:[#allocation15_spill]] }
 0x450   : > { %p1493_p5 = scmp.ge.s32.totalorder %s1805_s15, 2 }
 0x455   : > { %s1111_s12 = sand.u32 1, %s2226_s19   ;;  %p2228_p1 = scmp.ne.s32.totalorder %s2227_s25, 0 }
 0x456   : > { %s1112_s16 = scalar_lea.sflag [#allocation5], %s1111_s12 }
 0x457   : > { %p1490_p3 = pnand %p1493_p5, %p2228_p1 }
 0x459   : > { %1760 = dma.done.wait (!%p1490_p3), %s1112_s16, 64  }
 0x45a   : > { %1762 = vsyncadd (!%p1490_p3), %s1112_s16, 4294967232  ;;  %s24_s15 = sadd.s32 1, %s1805_s15   ;;  %s2229_s0 = sld [smem:[#allocation13_spill]] }
 0x45b   : > { %p21_p8 = scmp.ge.s32.totalorder %s24_s15, 6   ;;  %s2230_s17 = sld [smem:[#allocation10_spill]] }
 0x45c   : > { %s2231_s10 = sld [smem:[#allocation14_spill]]  ;;  %s2232_s23 = sld [smem:[#allocation11_spill]] }
 0x45d   : > { %s2233_s24 = sld [smem:[#allocation12_spill]]  ;;  %s2234_s27 = smov %s1781_s9 }
 0x45e   : > { %s2235_s28 = smov %s1773_s29  ;;  %s2236_s29 = smov %s1777_s30 }
 0x45f   : > { %s2239_s11 = smov %s1797_s13  ;;  %s2240_s12 = smov %s1801_s14 }
 0x460   : > { %s2237_s30 = smov %s2229_s0  ;;  %23 = sbr.rel (!%p21_p8) target bundleno = 12 (0xc), region = 161 }
 0x461   : > { %s2238_s9 = smov %s2230_s17 }
 0x462   : > { %s2241_s13 = smov %s2232_s23 }
 0x463   : > { %s2242_s14 = smov %s2233_s24 }
 0x467   :  { %1117 = vsyncpa [#allocation4], 1 }
 0x468   :  { %1119 = vsyncpa [#allocation4 + $0x1], 1 }
 0x469   :  { %1120 = vsyncpa [#allocation5], 1 }
 0x46a   :  { %1122 = vsyncpa [#allocation5 + $0x1], 1 }

</bundles_post_ra>
